<compile_context>
chip_gen: v6e
topology: v6e:2x2x1
jax: 0.10.0
libtpu: 0.0.40
codegen_flags: <defaults>
</compile_context>

<pallas_src>
import jax
import jax.numpy as jnp
from jax.experimental import pallas as pl
from jax.experimental.pallas import tpu as pltpu

# Problem sizes implied by the module (CartPole-style DQN defaults).
N_STATES = 4
N_ACTIONS = 2
HIDDEN = 50
BATCH = 2

# Padded / augmented sizes (vreg-aligned: 8 sublanes x 128 lanes).
K_PAD = 8                     # augmented input features (4 states + 1 ones + pad)
H_PAD = 128                   # hidden lanes (50 real + bias carrier + pad)
O_PAD = 128                   # lane-dense output width (2 real + pad)
BIAS_ROW = N_STATES           # index of the ones-column in x_aug (= 4)
BIAS_LANE = HIDDEN            # hidden lane carrying the constant 1 (= 50)
K_USED = N_STATES + 1         # rows of W1_aug that actually contribute (= 5)


def dqn_mlp_kernel(x_ref, w1_ref, w2_ref, o_ref):
    x = x_ref[...]            # (bt, K_PAD)  f32
    w1 = w1_ref[...]          # (K_PAD, H_PAD)

    # fc1 (+ folded b1) as VPU broadcast-FMAs; K is tiny so this skips an MXU
    # fill/drain round trip.  Row BIAS_ROW of W1_aug holds b1 and a 1.0 at
    # BIAS_LANE so h keeps a constant-1 lane that carries b2 through fc2.
    h = x[:, 0:1] * w1[0:1, :]
    for k in range(1, K_USED):            # static, unrolled at trace time
        h = h + x[:, k:k + 1] * w1[k:k + 1, :]
    h = jnp.maximum(h, 0.0)               # ReLU on the VPU (1.0 lane survives)

    # fc2 (+ folded b2) on the MXU: (bt, 128) @ (128, 128), lane-dense output.
    q = jnp.dot(h, w2_ref[...], preferred_element_type=jnp.float32)
    o_ref[...] = q.astype(o_ref.dtype)


def _round_up(n, m):
    return ((n + m - 1) // m) * m


def pack_params(w1, b1, w2, b2):
    """One-time host-side packing: fold biases into zero-padded weights."""
    w1 = jnp.asarray(w1, jnp.float32)     # (N_STATES, HIDDEN)
    b1 = jnp.asarray(b1, jnp.float32)     # (HIDDEN,)
    w2 = jnp.asarray(w2, jnp.float32)     # (HIDDEN, N_ACTIONS)
    b2 = jnp.asarray(b2, jnp.float32)     # (N_ACTIONS,)

    w1_aug = jnp.zeros((K_PAD, H_PAD), jnp.float32)
    w1_aug = w1_aug.at[:N_STATES, :HIDDEN].set(w1)
    w1_aug = w1_aug.at[BIAS_ROW, :HIDDEN].set(b1)
    w1_aug = w1_aug.at[BIAS_ROW, BIAS_LANE].set(1.0)   # bias carrier for fc2

    w2_aug = jnp.zeros((H_PAD, O_PAD), jnp.float32)
    w2_aug = w2_aug.at[:HIDDEN, :N_ACTIONS].set(w2)
    w2_aug = w2_aug.at[BIAS_LANE, :N_ACTIONS].set(b2)
    return w1_aug, w2_aug


def dqn_forward(x, w1_aug, w2_aug, *, batch_tile=256):
    """Forward pass: relu(x @ W1 + b1) @ W2 + b2 -> (B, N_ACTIONS)."""
    x = jnp.asarray(x, jnp.float32)
    if x.ndim == 1:                       # single state (act path)
        x = x[None, :]
    B = x.shape[0]

    # Batch tiling: pad to a sublane multiple; large batches split across a
    # "parallel" grid axis, tiny batches run as a single grid step.
    bt = min(batch_tile, _round_up(max(B, 1), 8))
    B_pad = _round_up(max(B, 1), bt)

    # Augmented input: [states | 1 | 0-pad]; padded batch rows are all-zero.
    x_aug = jnp.zeros((B_pad, K_PAD), jnp.float32)
    x_aug = x_aug.at[:B, :N_STATES].set(x)
    x_aug = x_aug.at[:B, BIAS_ROW].set(1.0)

    out = pl.pallas_call(
        dqn_mlp_kernel,
        out_shape=jax.ShapeDtypeStruct((B_pad, O_PAD), jnp.float32),
        grid=(B_pad // bt,),
        in_specs=[
            pl.BlockSpec((bt, K_PAD), lambda i: (i, 0)),
            pl.BlockSpec((K_PAD, H_PAD), lambda i: (0, 0)),
            pl.BlockSpec((H_PAD, O_PAD), lambda i: (0, 0)),
        ],
        out_specs=pl.BlockSpec((bt, O_PAD), lambda i: (i, 0)),
        compiler_params=pltpu.CompilerParams(
            dimension_semantics=("parallel",)),
    )(x_aug, w1_aug, w2_aug)

    # Slice padded, lane-dense output back to the logical shape.
    return out[:B, :N_ACTIONS]


def init_params(key):
    k1, k2, k3, k4 = jax.random.split(key, 4)
    # Matches the module: weights ~ Normal(0, 0.1); small nonzero biases to
    # exercise the bias-fold path (PyTorch's exact default bias init is not
    # reproduced bit-for-bit).
    w1 = 0.1 * jax.random.normal(k1, (N_STATES, HIDDEN), dtype=jnp.float32)
    b1 = 0.05 * jax.random.normal(k3, (HIDDEN,), dtype=jnp.float32)
    w2 = 0.1 * jax.random.normal(k2, (HIDDEN, N_ACTIONS), dtype=jnp.float32)
    b2 = 0.05 * jax.random.normal(k4, (N_ACTIONS,), dtype=jnp.float32)
    return w1, b1, w2, b2


if __name__ == "__main__":
    key = jax.random.PRNGKey(0)
    k_x, k_p = jax.random.split(key)

    x = jax.random.normal(k_x, (BATCH, N_STATES), dtype=jnp.float32)
    w1, b1, w2, b2 = init_params(k_p)

    # Pack (pad + bias-fold) weights once; reuse across calls.
    w1_aug, w2_aug = pack_params(w1, b1, w2, b2)

    actions_value = dqn_forward(x, w1_aug, w2_aug)
    jax.block_until_ready(actions_value)

    # Sanity check against a plain-JAX reference of the same forward pass.
    ref = jnp.maximum(x @ w1 + b1, 0.0) @ w2 + b2
    assert actions_value.shape == (BATCH, N_ACTIONS)
    assert jnp.allclose(actions_value, ref, atol=1e-5, rtol=1e-5)

    print("KERNEL_OK")
</pallas_src>

<mosaic_0001>
module attributes {stable_mosaic.version = 11 : i64} {
  func.func @dqn_mlp_kernel(%arg0: i32, %arg1: memref<8x8xf32, #tpu.memory_space<vmem>>, %arg2: memref<8x128xf32, #tpu.memory_space<vmem>>, %arg3: memref<128x128xf32, #tpu.memory_space<vmem>>, %arg4: memref<8x128xf32, #tpu.memory_space<vmem>>) attributes {dimension_semantics = [#tpu.dimension_semantics<parallel>], iteration_bounds = array<i64: 1>, scalar_prefetch = 0 : i64, scratch_operands = 0 : i64, tpu.core_type = #tpu.core_type<tc>, window_params = [{transform_indices = @transform_0, window_bounds = array<i64: 8, 8>}, {pipeline_mode = #tpu.pipeline_mode<synchronous>, transform_indices = @transform_1, window_bounds = array<i64: 8, 128>}, {pipeline_mode = #tpu.pipeline_mode<synchronous>, transform_indices = @transform_2, window_bounds = array<i64: 128, 128>}, {transform_indices = @transform_3, window_bounds = array<i64: 8, 128>}]} {
    %c0 = arith.constant 0 : index
    %c0_0 = arith.constant 0 : index
    %0 = vector.load %arg1[%c0, %c0_0] : memref<8x8xf32, #tpu.memory_space<vmem>>, vector<8x8xf32>
    %c0_1 = arith.constant 0 : index
    %c0_2 = arith.constant 0 : index
    %1 = vector.load %arg2[%c0_1, %c0_2] : memref<8x128xf32, #tpu.memory_space<vmem>>, vector<8x128xf32>
    %2 = vector.extract_strided_slice %0 {offsets = [0, 0], sizes = [8, 1], strides = [1, 1]} : vector<8x8xf32> to vector<8x1xf32>
    %3 = vector.extract_strided_slice %1 {offsets = [0, 0], sizes = [1, 128], strides = [1, 1]} : vector<8x128xf32> to vector<1x128xf32>
    %4 = vector.broadcast %2 : vector<8x1xf32> to vector<8x128xf32>
    %5 = vector.broadcast %3 : vector<1x128xf32> to vector<8x128xf32>
    %6 = arith.mulf %4, %5 : vector<8x128xf32>
    %7 = vector.extract_strided_slice %0 {offsets = [0, 1], sizes = [8, 1], strides = [1, 1]} : vector<8x8xf32> to vector<8x1xf32>
    %8 = vector.extract_strided_slice %1 {offsets = [1, 0], sizes = [1, 128], strides = [1, 1]} : vector<8x128xf32> to vector<1x128xf32>
    %9 = vector.broadcast %7 : vector<8x1xf32> to vector<8x128xf32>
    %10 = vector.broadcast %8 : vector<1x128xf32> to vector<8x128xf32>
    %11 = arith.mulf %9, %10 : vector<8x128xf32>
    %12 = arith.addf %6, %11 : vector<8x128xf32>
    %13 = vector.extract_strided_slice %0 {offsets = [0, 2], sizes = [8, 1], strides = [1, 1]} : vector<8x8xf32> to vector<8x1xf32>
    %14 = vector.extract_strided_slice %1 {offsets = [2, 0], sizes = [1, 128], strides = [1, 1]} : vector<8x128xf32> to vector<1x128xf32>
    %15 = vector.broadcast %13 : vector<8x1xf32> to vector<8x128xf32>
    %16 = vector.broadcast %14 : vector<1x128xf32> to vector<8x128xf32>
    %17 = arith.mulf %15, %16 : vector<8x128xf32>
    %18 = arith.addf %12, %17 : vector<8x128xf32>
    %19 = vector.extract_strided_slice %0 {offsets = [0, 3], sizes = [8, 1], strides = [1, 1]} : vector<8x8xf32> to vector<8x1xf32>
    %20 = vector.extract_strided_slice %1 {offsets = [3, 0], sizes = [1, 128], strides = [1, 1]} : vector<8x128xf32> to vector<1x128xf32>
    %21 = vector.broadcast %19 : vector<8x1xf32> to vector<8x128xf32>
    %22 = vector.broadcast %20 : vector<1x128xf32> to vector<8x128xf32>
    %23 = arith.mulf %21, %22 : vector<8x128xf32>
    %24 = arith.addf %18, %23 : vector<8x128xf32>
    %25 = vector.extract_strided_slice %0 {offsets = [0, 4], sizes = [8, 1], strides = [1, 1]} : vector<8x8xf32> to vector<8x1xf32>
    %26 = vector.extract_strided_slice %1 {offsets = [4, 0], sizes = [1, 128], strides = [1, 1]} : vector<8x128xf32> to vector<1x128xf32>
    %27 = vector.broadcast %25 : vector<8x1xf32> to vector<8x128xf32>
    %28 = vector.broadcast %26 : vector<1x128xf32> to vector<8x128xf32>
    %29 = arith.mulf %27, %28 : vector<8x128xf32>
    %30 = arith.addf %24, %29 : vector<8x128xf32>
    %cst = arith.constant 0.000000e+00 : f32
    %31 = vector.broadcast %cst : f32 to vector<8x128xf32>
    %32 = arith.maximumf %30, %31 : vector<8x128xf32>
    %c0_3 = arith.constant 0 : index
    %c0_4 = arith.constant 0 : index
    %33 = vector.load %arg3[%c0_3, %c0_4] : memref<128x128xf32, #tpu.memory_space<vmem>>, vector<128x128xf32>
    %cst_5 = arith.constant dense<0.000000e+00> : vector<8x128xf32>
    %34 = tpu.matmul %32, %33, %cst_5 {dimension_numbers = #tpu.dot_dimension_numbers<[1], [0], [0], [1], [0, 0, 1, 1], [], []>} : vector<8x128xf32>, vector<128x128xf32>, vector<8x128xf32> -> vector<8x128xf32>
    %c0_6 = arith.constant 0 : index
    %c0_7 = arith.constant 0 : index
    %35 = vector.load %arg4[%c0_6, %c0_7] : memref<8x128xf32, #tpu.memory_space<vmem>>, vector<8x128xf32>
    tpu.vector_store %arg4[%c0_6, %c0_7], %34 {strides = array<i32>} : memref<8x128xf32, #tpu.memory_space<vmem>>, vector<8x128xf32>,
    return
  }
  func.func @transform_0(%arg0: i32) -> (i32, i32) {
    %c0_i32 = arith.constant 0 : i32
    %c0_i32_0 = arith.constant 0 : i32
    return %arg0, %c0_i32 : i32, i32
  }
  func.func @transform_1(%arg0: i32) -> (i32, i32) {
    %c0_i32 = arith.constant 0 : i32
    %c0_i32_0 = arith.constant 0 : i32
    %c0_i32_1 = arith.constant 0 : i32
    return %c0_i32, %c0_i32_0 : i32, i32
  }
  func.func @transform_2(%arg0: i32) -> (i32, i32) {
    %c0_i32 = arith.constant 0 : i32
    %c0_i32_0 = arith.constant 0 : i32
    %c0_i32_1 = arith.constant 0 : i32
    return %c0_i32, %c0_i32_0 : i32, i32
  }
  func.func @transform_3(%arg0: i32) -> (i32, i32) {
    %c0_i32 = arith.constant 0 : i32
    %c0_i32_0 = arith.constant 0 : i32
    return %arg0, %c0_i32 : i32, i32
  }
}

</mosaic_0001>

<bundles_post_ra>
// kernel: tpu_custom_call.1
= control target key start
LH: loop header
LB: loop body
LE: loop exit
PB: predicated region body
PF: predicated region fallthrough
CT: control target
= control target key end

     0   :  { %8 = vsyncpa [#allocation3], 0  ;;  %s410_s0 = inlined_call_operand.hbm [shape: f32[8,8], index: 0, kind: input, shape index: {}]   ;;  %s411_s1 = inlined_call_operand.hbm [shape: f32[8,128], index: 1, kind: input, shape index: {}]   ;;  %s412_s2 = inlined_call_operand.hbm [shape: f32[128,128], index: 2, kind: input, shape index: {}]   ;;  %s413_s3 = inlined_call_operand.hbm [shape: f32[8,128], index: 3, kind: output, shape index: {}]  }
   0x1   :  { %9 = vsyncpa [#allocation6], 0 }
   0x2   :  { %10 = vsyncpa [#allocation4], 0  ;;  %s365_s12 = smov [#allocation5]   ;;  %s366_s14 = smov [#allocation2]  }
   0x3   :  { %s27_s13 = sshll.u32 %s365_s12, 4  ;;  %s17_s15 = sshll.u32 %s366_s14, 4  ;;  %s28_s13 = int_to_ptr.vmem [resolvable:$true] %s27_s13  ;;  %s18_s15 = int_to_ptr.vmem [resolvable:$true] %s17_s15 }
   0x4   :  { %s287_s16 = scalar_lea.vmem %s28_s13, 128  ;;  %p292_p1 = scmp.lt.s32.totalorder %s28_s13, %s28_s13 }
   0x5   :  { %p288_p0 = scmp.ne.s32.totalorder %s28_s13, %s287_s16  ;;  %p293_p2 = scmp.lt.s32.totalorder %s287_s16, %s287_s16 }
   0x7   :  { %p294_p3 = por %p293_p2, %p292_p1 }
   0x9   :  { %p295_p4 = pnand %p294_p3, %p288_p0 }
   0xb   :  { %298 = shalt.err (!%p295_p4)
}
   0xc   :  { %30 = dma.hbm_to_vmem [thread:$0]  %s411_s1, 128, %s28_s13, [#allocation6]  }
   0xd   :  { %s307_s19 = scalar_lea.vmem %s18_s15, 128  ;;  %p312_p6 = scmp.lt.s32.totalorder %s18_s15, %s18_s15 }
   0xe   :  { %p308_p5 = scmp.ne.s32.totalorder %s18_s15, %s307_s19  ;;  %p313_p7 = scmp.lt.s32.totalorder %s307_s19, %s307_s19 }
  0x10   :  { %p314_p8 = por %p313_p7, %p312_p6 }
  0x12   :  { %p315_p9 = pnand %p314_p8, %p308_p5 }
  0x14   :  { %318 = shalt.err (!%p315_p9)
}
  0x15   :  { %20 = dma.hbm_to_vmem [thread:$0]  %s410_s0, 128, %s18_s15, [#allocation3]  }
  0x16   :  { %s367_s22 = smov [#allocation7]  }
  0x17   :  { %s36_s23 = sshll.u32 %s367_s22, 4  ;;  %s37_s23 = int_to_ptr.vmem [resolvable:$true] %s36_s23 }
  0x18   :  { %s327_s24 = scalar_lea.vmem %s37_s23, 2048  ;;  %p332_p11 = scmp.lt.s32.totalorder %s37_s23, %s37_s23 }
  0x19   :  { %p328_p10 = scmp.ne.s32.totalorder %s37_s23, %s327_s24  ;;  %p333_p12 = scmp.lt.s32.totalorder %s327_s24, %s327_s24 }
  0x1b   :  { %p334_p13 = por %p333_p12, %p332_p11 }
  0x1d   :  { %p335_p0 = pnand %p334_p13, %p328_p10 }
  0x1f   :  { %338 = shalt.err (!%p335_p0)
}
  0x20   :  { %s368_s1 = smov 128   ;;  %s369_s25 = smov 8  }
  0x21   :  { %42 = dma.hbm_to_vmem [thread:$0]  %s412_s2, 2048, %s37_s23, [#allocation6], %s368_s1, %s368_s1, %s369_s25  }
  0x22   :  { %359 = dma.done.wait [#allocation3], 128  }
  0x23   :  { %360 = vsyncadd [#allocation3], 4294967168 }
  0x24   :  { %361 = dma.done.wait [#allocation6], 2176  }
  0x25   :  { %362 = vsyncadd [#allocation6], 4294965120  ;;  %v370_v0 = vmov 0   ;;  %v371_v1 = vmov 2   ;;  %v372_v2 = vmov 0.0   ;;  %v52_v3 = vld [vmem:[#allocation2] sm:$0xff]  ;;  %v59_v23 = vlaneseq }
  0x26   :  { %273 = vset.pattern.permute.xlu0 %v370_v0  ;;  %275 = vset.pattern.permute.xlu1 %v371_v1  ;;  %v120_v4 = vld [vmem:[#allocation7 + $0x78] sm:$0xff]  ;;  %v119_v5 = vld [vmem:[#allocation7 + $0x70] sm:$0xff]  ;;  %v373_v6 = vmov 1   ;;  %v374_v7 = vmov 3   ;;  %v118_v8 = vld [vmem:[#allocation7 + $0x68] sm:$0xff]  ;;  %v375_v11 = vmov 4  }
  0x27   :  { %225 = vmatprep.subr.mxu0 %v372_v2  ;;  %56 = vperm.xlu0 %273, %v52_v3   ;;  %v117_v9 = vld [vmem:[#allocation7 + $0x60] sm:$0xff]  ;;  %v116_v10 = vld [vmem:[#allocation7 + $0x58] sm:$0xff]  ;;  %v115_v12 = vld [vmem:[#allocation7 + $0x50] sm:$0xff]  ;;  %vm376_vm0 = vmmov 0   ;;  %v60_v24 = vshrl.u32 %v59_v23, 7  ;;  %s377_s0 = smov [#allocation8]  }
  0x28   :  { %75 = vperm.xlu1 %275, %v52_v3   ;;  %226 = vmatpush3.msra.mxu0 %v120_v4  ;;  %v114_v13 = vld [vmem:[#allocation7 + $0x48] sm:$0xff]  ;;  %v113_v14 = vld [vmem:[#allocation7 + $0x40] sm:$0xff]  ;;  %v112_v15 = vld [vmem:[#allocation7 + $0x38] sm:$0xff]  ;;  %s198_s2 = sshll.u32 %s377_s0, 4  ;;  %s199_s2 = int_to_ptr.vmem [resolvable:$true] %s198_s2 }
  0x29   :  { %227 = vmatprep.subr.mxu0 %v372_v2  ;;  %257 = vmatprep.mubr.msk.f32.mxu0 %vm376_vm0, %v372_v2  ;;  %v111_v16 = vld [vmem:[#allocation7 + $0x30] sm:$0xff]  ;;  %v110_v17 = vld [vmem:[#allocation7 + $0x28] sm:$0xff]  ;;  %v109_v18 = vld [vmem:[#allocation7 + $0x20] sm:$0xff]  ;;  %v61_v25 = vsub.s32 0, %v60_v24  ;;  %v70_v26 = vsub.s32 1, %v60_v24  ;;  %v80_v29 = vsub.s32 2, %v60_v24  ;;  %p344_p2 = scmp.lt.s32.totalorder %s199_s2, %s199_s2 }
  0x2a   :  { %228 = vmatpush3.msra.mxu0 %v119_v5  ;;  %v108_v19 = vld [vmem:[#allocation7 + $0x18] sm:$0xff]  ;;  %v107_v20 = vld [vmem:[#allocation7 + $0x10] sm:$0xff]  ;;  %v106_v21 = vld [vmem:[#allocation7 + $0x8] sm:$0xff]  ;;  %v90_v33 = vsub.s32 3, %v60_v24  ;;  %v100_v34 = vsub.s32 4, %v60_v24  ;;  %s339_s28 = scalar_lea.vmem %s199_s2, 128 }
  0x2b   :  { %274 = vset.pattern.permute.xlu0 %v373_v6  ;;  %229 = vmatprep.subr.mxu0 %v372_v2  ;;  %v105_v22 = vld [vmem:[#allocation7] sm:$0xff]  ;;  %v53_v27 = vld [vmem:[#allocation5] sm:$0xff]  ;;  %p340_p1 = scmp.ne.s32.totalorder %s199_s2, %s339_s28  ;;  %p345_p3 = scmp.lt.s32.totalorder %s339_s28, %s339_s28 }
  0x2c   :  { %276 = vset.pattern.permute.xlu1 %v374_v7  ;;  %65 = vperm.xlu0 %274, %v52_v3   ;;  %v62_v31 = vrot.slane %v53_v27, %v61_v25  ;;  %v71_v32 = vrot.slane %v53_v27, %v70_v26  ;;  %v81_v35 = vrot.slane %v53_v27, %v80_v29 }
  0x2d   :  { %85 = vperm.xlu1 %276, %v52_v3   ;;  %230 = vmatpush3.msra.mxu0 %v118_v8  ;;  %v91_v40 = vrot.slane %v53_v27, %v90_v33  ;;  %v101_v41 = vrot.slane %v53_v27, %v100_v34  ;;  %p346_p4 = por %p345_p3, %p344_p2 }
  0x2e   :  { %231 = vmatprep.subr.mxu0 %v372_v2 }
  0x2f   :  { %232 = vmatpush3.msra.mxu0 %v117_v9  ;;  %p347_p5 = pnand %p346_p4, %p340_p1 }
  0x30   :  { %233 = vmatprep.subr.mxu0 %v372_v2  ;;  %278 = vset.pattern.permute.xlu0 %v375_v11 }
  0x31   :  { %277 = vset.pattern.permute.xlu1 %v375_v11  ;;  %234 = vmatpush3.msra.mxu0 %v116_v10 }
  0x32   :  { %95 = vperm.xlu1 %277, %v52_v3   ;;  %235 = vmatprep.subr.mxu0 %v372_v2 }
  0x33   :  { %236 = vmatpush3.msra.mxu0 %v115_v12 }
  0x34   :  { %237 = vmatprep.subr.mxu0 %v372_v2 }
  0x35   :  { %238 = vmatpush3.msra.mxu0 %v114_v13 }
  0x36   :  { %239 = vmatprep.subr.mxu0 %v372_v2 }
  0x37   :  { %240 = vmatpush3.msra.mxu0 %v113_v14 }
  0x38   :  { %241 = vmatprep.subr.mxu0 %v372_v2 }
  0x39   :  { %242 = vmatpush3.msra.mxu0 %v112_v15 }
  0x3a   :  { %243 = vmatprep.subr.mxu0 %v372_v2 }
  0x3b   :  { %244 = vmatpush3.msra.mxu0 %v111_v16 }
  0x3c   :  { %245 = vmatprep.subr.mxu0 %v372_v2 }
  0x3d   :  { %246 = vmatpush3.msra.mxu0 %v110_v17 }
  0x3e   :  { %247 = vmatprep.subr.mxu0 %v372_v2 }
  0x3f   :  { %248 = vmatpush3.msra.mxu0 %v109_v18 }
  0x40   :  { %249 = vmatprep.subr.mxu0 %v372_v2 }
  0x41   :  { %250 = vmatpush3.msra.mxu0 %v108_v19 }
  0x42   :  { %251 = vmatprep.subr.mxu0 %v372_v2 }
  0x43   :  { %252 = vmatpush3.msra.mxu0 %v107_v20 }
  0x44   :  { %253 = vmatprep.subr.mxu0 %v372_v2 }
  0x45   :  { %254 = vmatpush3.msra.mxu0 %v106_v21 }
  0x46   :  { %255 = vmatprep.subr.mxu0 %v372_v2 }
  0x47   :  { %256 = vmatpush3.msra.mxu0 %v105_v22 }
  0xa2   :  { %v57_v28 = vpop.permute.xlu0 %56 }
  0xa3   :  { %v76_v30 = vpop.permute.xlu1 %75  ;;  %v63_v38 = vmul.f32 %v62_v31, %v57_v28 }
  0xa4   :  { %v82_v42 = vmul.f32 %v81_v35, %v76_v30 }
  0xa7   :  { %v66_v36 = vpop.permute.xlu0 %65 }
  0xa8   :  { %v86_v37 = vpop.permute.xlu1 %85  ;;  %v72_v39 = vmul.f32 %v71_v32, %v66_v36 }
  0xa9   :  { %v92_v45 = vmul.f32 %v91_v40, %v86_v37 }
  0xaa   :  { %v73_v43 = vadd.f32 %v72_v39, %v63_v38 }
  0xac   :  { %v83_v44 = vadd.f32 %v82_v42, %v73_v43 }
  0xad   :  { %v96_v46 = vpop.permute.xlu1 %95 }
  0xae   :  { %v102_v47 = vmul.f32 %v101_v41, %v96_v46  ;;  %v93_v48 = vadd.f32 %v92_v45, %v83_v44 }
  0xb0   :  { %v103_v49 = vadd.f32 %v102_v47, %v93_v48 }
  0xb2   :  { %v104_v50 = vmax.f32 %v103_v49, 0.0 }
  0xb4   :  { %258 = vmatmul.mubr.f32.vlgmr.msra.gmra.mxu0 %v104_v50 }
 0x174   :  { %v187_v51 = vpop.f32.mrf.mxu0 }
 0x175   :  { %191 = vst [vmem:[#allocation8] sm:$0xff] %v187_v51 }
 0x176   :  { %v259_v52 = vpop.f32.mrf.mxu0 }
 0x177   :  { %350 = shalt.err (!%p347_p5)
}
 0x178   :  { %201 = dma.vmem_to_hbm [thread:$0]  %s199_s2, 128, %s413_s3, [#allocation4]  }
 0x179   :  { %363 = dma.done.wait [#allocation4], 128  }
 0x17a   :  { %364 = vsyncadd [#allocation4], 4294967168 }
 0x17b   :  { %205 = vsyncpa [#allocation3], 1 }
 0x17c   :  { %206 = vsyncpa [#allocation6], 1 }
 0x17d   :  { %207 = vsyncpa [#allocation4], 1 }

</bundles_post_ra>
